<compile_context>
chip_gen: v5e
topology: v5e:2x2
jax: 0.10.0
libtpu: 0.0.40
codegen_flags: <defaults>
</compile_context>

<pallas_src>
import functools

import jax
import jax.numpy as jnp
from jax import lax
from jax.experimental import pallas as pl
from jax.experimental.pallas import tpu as pltpu


def head_kernel(x_ref, wk_ref, wq_ref, wv_ref, out_ref, *, seq_len, compute_dtype):
    # x_ref: (Bblk*T, C); w*_ref: (C, H); out_ref: (Bblk, T*H)
    T = seq_len
    C, H = wk_ref.shape
    Bblk = out_ref.shape[0]

    x2d = x_ref[...].astype(compute_dtype)                       # (Bblk*T, C), no in-kernel reshape
    # Three small MXU matmuls (f32 accumulation). Keeping K/Q/V separate avoids the
    # sub-(8,128)-tile lane slices a fused (C, 3H) projection would need afterwards.
    k = jnp.dot(x2d, wk_ref[...].astype(compute_dtype), preferred_element_type=jnp.float32)
    q = jnp.dot(x2d, wq_ref[...].astype(compute_dtype), preferred_element_type=jnp.float32)
    v = jnp.dot(x2d, wv_ref[...].astype(compute_dtype), preferred_element_type=jnp.float32)

    # (Bblk*T, H) -> (Bblk, T, H): splits on sublane-tile boundaries (T % 8 == 0),
    # no lane relayout. The C**-0.5 scale is already folded into W_q wrapper-side.
    k = k.reshape(Bblk, T, H)
    q = q.reshape(Bblk, T, H)
    v = v.reshape(Bblk, T, H)

    # Scores (Bblk, T, T); axis 1 = query index i, axis 2 = key index j.
    wei = jnp.einsum(
        "bqh,bkh->bqk",
        q.astype(compute_dtype), k.astype(compute_dtype),
        preferred_element_type=jnp.float32,
    )
    # TODO(synk): the module also stashes the pre-mask scores in
    # self.pre_mask_attention_weights; that side buffer is not materialized here.

    # Causal mask built in-kernel (no tril input): mask where key j > query i.
    row = lax.broadcasted_iota(jnp.int32, (T, T), 0)   # query index i
    col = lax.broadcasted_iota(jnp.int32, (T, T), 1)   # key index j
    wei = jnp.where((col > row)[None, :, :], -jnp.inf, wei)

    # softmax over torch dim=1 == the query axis (axis 1 here). Every key column j
    # has valid rows i >= j, so the per-column max is finite. Exact f32 math
    # (approximate reciprocal is not bit-faithful enough for 1e-3 parity).
    # TODO(synk): a transposed (b,k,q) score layout would put the softmax axis on
    # lanes (XLU fast path); modest win at T=8, so not done here.
    m = jnp.max(wei, axis=1, keepdims=True)            # (Bblk, 1, T)
    e = jnp.exp(wei - m)                               # masked entries -> 0
    wei = e / jnp.sum(e, axis=1, keepdims=True)

    out = jnp.einsum(
        "bij,bjh->bih",
        wei.astype(compute_dtype), v.astype(compute_dtype),
        preferred_element_type=jnp.float32,
    )
    # Lane-dense store: fold (Bblk, T, H) -> (Bblk, T*H) (128 lanes here).
    out_ref[...] = out.reshape(Bblk, T * H).astype(out_ref.dtype)


def _is_v7x():
    try:
        return "v7" in jax.devices()[0].device_kind.lower()
    except Exception:
        return False


def _pick_batch_block(B, T, C, H, *, is_v7x=False):
    """Per-step batch block.

    v5e/v6e: single TensorCore -> grid steps are a serial loop (~0.35us each), so
    take the largest block that fits the VMEM budget (usually the whole batch).
    v7x: two TensorCores and only 64 MiB VMEM -> prefer an even split and halve
    the per-step budget.
    """
    # Rough per-batch-element VMEM bytes for one pipelined step (f32): double-buffered
    # x and out blocks + k/q/v + score/exp intermediates.
    per_b = 4 * (2 * T * C + 2 * T * H + 3 * T * H + 2 * T * T)
    budget = (10 << 20) if is_v7x else (24 << 20)
    cap = max(1, budget // per_b)
    # Sublane-friendly blocks for the folded (B, T*H) output: block == B or multiple of 8.
    cands = [d for d in range(1, B + 1)
             if B % d == 0 and d <= cap and (d == B or d % 8 == 0)]
    if not cands:
        cands = [min(d for d in range(1, B + 1)
                     if B % d == 0 and (d == B or d % 8 == 0))]
    block_b = max(cands)
    if is_v7x and block_b == B and B > 1:
        halves = [d for d in cands if d * 2 <= B]
        if halves:                      # even split so both TCs get work
            block_b = max(halves)
    return block_b


def head_forward(x, wk, wq, wv, *, compute_dtype=jnp.float32, block_b=None):
    B, T, C = x.shape
    H = wk.shape[0]

    is_v7x = _is_v7x()
    if block_b is None:
        block_b = _pick_batch_block(B, T, C, H, is_v7x=is_v7x)
    assert B % block_b == 0, "block_b must divide batch"
    assert block_b == B or T % 8 == 0, "flattened x blocks need T % 8 == 0"
    assert block_b == B or block_b % 8 == 0, "folded output blocks need block_b % 8 == 0"

    # Wrapper-side layout prep (one-time / cheap XLA ops, not per-step kernel work):
    #  - x flattened to 2D so the kernel never reshapes its input block,
    #  - MXU-native (C, H) weights, with the C**-0.5 scale folded into W_q.
    x2d = x.reshape(B * T, C)
    wk_t = wk.T
    wq_t = wq.T * (C ** (-0.5))
    wv_t = wv.T

    kernel = functools.partial(head_kernel, seq_len=T, compute_dtype=compute_dtype)

    # Scoped-VMEM ceiling: generous on v5e/v6e (128 MiB physical), tighter on v7x (64 MiB).
    vmem_limit_bytes = (40 << 20) if is_v7x else (64 << 20)

    out2d = pl.pallas_call(
        kernel,
        out_shape=jax.ShapeDtypeStruct((B, T * H), jnp.float32),
        grid_spec=pltpu.PrefetchScalarGridSpec(
            num_scalar_prefetch=0,
            grid=(B // block_b,),
            in_specs=[
                pl.BlockSpec((block_b * T, C), lambda b: (b, 0)),   # x rows for this step
                pl.BlockSpec((C, H), lambda b: (0, 0)),             # W_k^T (full)
                pl.BlockSpec((C, H), lambda b: (0, 0)),             # W_q^T * C**-0.5 (full)
                pl.BlockSpec((C, H), lambda b: (0, 0)),             # W_v^T (full)
            ],
            out_specs=pl.BlockSpec((block_b, T * H), lambda b: (b, 0)),  # lane-dense slab
        ),
        compiler_params=pltpu.CompilerParams(
            dimension_semantics=("parallel",),
            vmem_limit_bytes=vmem_limit_bytes,
        ),
    )(x2d, wk_t, wq_t, wv_t)

    return out2d.reshape(B, T, H)


def head_reference(x, wk, wq, wv):
    # Pure-JAX reference mirroring the PyTorch forward exactly.
    B, T, C = x.shape
    k = x @ wk.T
    q = x @ wq.T
    v = x @ wv.T
    wei = (q @ jnp.swapaxes(k, -2, -1)) * (C ** -0.5)
    tril = jnp.tril(jnp.ones((T, T), dtype=jnp.float32))
    wei = jnp.where(tril == 0.0, -jnp.inf, wei)
    wei = jax.nn.softmax(wei, axis=1)   # torch dim=1 (query axis)
    return wei @ v


if __name__ == "__main__":
    # Small, module-consistent shapes (T == block_size; T*H == 128 -> lane-dense output).
    B = 8
    block_size = 8
    T = block_size
    embed_size = 32      # C
    head_size = 16       # H

    key = jax.random.PRNGKey(0)
    kx, kk, kq, kv = jax.random.split(key, 4)

    x = jax.random.normal(kx, (B, T, embed_size), dtype=jnp.float32)
    # nn.Linear weight shape: (out_features, in_features); deterministic synthetic init.
    wk = jax.random.normal(kk, (head_size, embed_size), dtype=jnp.float32) * 0.1
    wq = jax.random.normal(kq, (head_size, embed_size), dtype=jnp.float32) * 0.1
    wv = jax.random.normal(kv, (head_size, embed_size), dtype=jnp.float32) * 0.1

    ref = head_reference(x, wk, wq, wv)

    # f32 matmul path (default; exact softmax divide).
    out = jax.block_until_ready(head_forward(x, wk, wq, wv))
    assert out.shape == (B, T, head_size)
    assert jnp.allclose(out, ref, atol=1e-3, rtol=1e-3), "f32 kernel mismatch vs reference"

    # bf16 matmul operands with f32 accumulation (fast MXU path on v5e/v6e/v7x).
    out_bf16 = jax.block_until_ready(
        head_forward(x, wk, wq, wv, compute_dtype=jnp.bfloat16)
    )
    assert jnp.allclose(out_bf16, ref, atol=5e-2, rtol=5e-2), "bf16 kernel mismatch vs reference"

    print("KERNEL_OK")
</pallas_src>

<mosaic_0001>
module attributes {stable_mosaic.version = 11 : i64} {
  func.func @head_kernel(%arg0: i32, %arg1: memref<64x32xf32, #tpu.memory_space<vmem>>, %arg2: memref<32x16xf32, #tpu.memory_space<vmem>>, %arg3: memref<32x16xf32, #tpu.memory_space<vmem>>, %arg4: memref<32x16xf32, #tpu.memory_space<vmem>>, %arg5: memref<8x128xf32, #tpu.memory_space<vmem>>) attributes {dimension_semantics = [#tpu.dimension_semantics<parallel>], iteration_bounds = array<i64: 1>, scalar_prefetch = 0 : i64, scratch_operands = 0 : i64, tpu.core_type = #tpu.core_type<tc>, window_params = [{transform_indices = @transform_0, window_bounds = array<i64: 64, 32>}, {pipeline_mode = #tpu.pipeline_mode<synchronous>, transform_indices = @transform_1, window_bounds = array<i64: 32, 16>}, {pipeline_mode = #tpu.pipeline_mode<synchronous>, transform_indices = @transform_2, window_bounds = array<i64: 32, 16>}, {pipeline_mode = #tpu.pipeline_mode<synchronous>, transform_indices = @transform_3, window_bounds = array<i64: 32, 16>}, {transform_indices = @transform_4, window_bounds = array<i64: 8, 128>}]} {
    %c0 = arith.constant 0 : index
    %c0_0 = arith.constant 0 : index
    %0 = vector.load %arg1[%c0, %c0_0] : memref<64x32xf32, #tpu.memory_space<vmem>>, vector<64x32xf32>
    %c0_1 = arith.constant 0 : index
    %c0_2 = arith.constant 0 : index
    %1 = vector.load %arg2[%c0_1, %c0_2] : memref<32x16xf32, #tpu.memory_space<vmem>>, vector<32x16xf32>
    %cst = arith.constant dense<0.000000e+00> : vector<64x16xf32>
    %2 = tpu.matmul %0, %1, %cst {dimension_numbers = #tpu.dot_dimension_numbers<[1], [0], [0], [1], [0, 0, 1, 1], [], []>} : vector<64x32xf32>, vector<32x16xf32>, vector<64x16xf32> -> vector<64x16xf32>
    %c0_3 = arith.constant 0 : index
    %c0_4 = arith.constant 0 : index
    %3 = vector.load %arg3[%c0_3, %c0_4] : memref<32x16xf32, #tpu.memory_space<vmem>>, vector<32x16xf32>
    %cst_5 = arith.constant dense<0.000000e+00> : vector<64x16xf32>
    %4 = tpu.matmul %0, %3, %cst_5 {dimension_numbers = #tpu.dot_dimension_numbers<[1], [0], [0], [1], [0, 0, 1, 1], [], []>} : vector<64x32xf32>, vector<32x16xf32>, vector<64x16xf32> -> vector<64x16xf32>
    %c0_6 = arith.constant 0 : index
    %c0_7 = arith.constant 0 : index
    %5 = vector.load %arg4[%c0_6, %c0_7] : memref<32x16xf32, #tpu.memory_space<vmem>>, vector<32x16xf32>
    %cst_8 = arith.constant dense<0.000000e+00> : vector<64x16xf32>
    %6 = tpu.matmul %0, %5, %cst_8 {dimension_numbers = #tpu.dot_dimension_numbers<[1], [0], [0], [1], [0, 0, 1, 1], [], []>} : vector<64x32xf32>, vector<32x16xf32>, vector<64x16xf32> -> vector<64x16xf32>
    %7 = vector.shape_cast %2 : vector<64x16xf32> to vector<8x8x16xf32>
    %8 = vector.shape_cast %4 : vector<64x16xf32> to vector<8x8x16xf32>
    %9 = vector.shape_cast %6 : vector<64x16xf32> to vector<8x8x16xf32>
    "tpu.trace_start"() <{level = 10 : i32, message = "bqh,bkh->bqk"}> : () -> ()
    %cst_9 = arith.constant dense<0.000000e+00> : vector<8x8x8xf32>
    %10 = tpu.matmul %8, %7, %cst_9 {dimension_numbers = #tpu.dot_dimension_numbers<[2], [2], [1], [1], [0, 0, 0, 1, 1, 1], [0], [0]>} : vector<8x8x16xf32>, vector<8x8x16xf32>, vector<8x8x8xf32> -> vector<8x8x8xf32>
    "tpu.trace_stop"() : () -> ()
    %11 = tpu.iota {dimensions = array<i32: 0>} : vector<8x8xi32>
    %12 = tpu.iota {dimensions = array<i32: 1>} : vector<8x8xi32>
    %13 = arith.cmpi sgt, %12, %11 : vector<8x8xi32>
    %14 = vector.shape_cast %13 : vector<8x8xi1> to vector<1x8x8xi1>
    %cst_10 = arith.constant 0xFF800000 : f32
    %15 = vector.shape_cast %14 : vector<1x8x8xi1> to vector<1x8x8xi1>
    %16 = vector.broadcast %15 : vector<1x8x8xi1> to vector<8x8x8xi1>
    %17 = vector.broadcast %cst_10 : f32 to vector<8x8x8xf32>
    %18 = arith.select %16, %17, %10 : vector<8x8x8xi1>, vector<8x8x8xf32>
    %cst_11 = arith.constant dense<0xFF800000> : vector<8x8xf32>
    %19 = vector.multi_reduction <maximumf>, %18, %cst_11 [1] : vector<8x8x8xf32> to vector<8x8xf32>
    %20 = vector.shape_cast %19 : vector<8x8xf32> to vector<8x1x8xf32>
    %21 = vector.broadcast %20 : vector<8x1x8xf32> to vector<8x8x8xf32>
    %22 = arith.subf %18, %21 : vector<8x8x8xf32>
    %23 = math.exp %22 : vector<8x8x8xf32>
    %cst_12 = arith.constant dense<0.000000e+00> : vector<8x8xf32>
    %24 = vector.multi_reduction <add>, %23, %cst_12 [1] : vector<8x8x8xf32> to vector<8x8xf32>
    %25 = vector.shape_cast %24 : vector<8x8xf32> to vector<8x1x8xf32>
    %26 = vector.broadcast %25 : vector<8x1x8xf32> to vector<8x8x8xf32>
    %27 = arith.divf %23, %26 : vector<8x8x8xf32>
    "tpu.trace_start"() <{level = 10 : i32, message = "bij,bjh->bih"}> : () -> ()
    %cst_13 = arith.constant dense<0.000000e+00> : vector<8x8x16xf32>
    %28 = tpu.matmul %27, %9, %cst_13 {dimension_numbers = #tpu.dot_dimension_numbers<[2], [1], [1], [2], [0, 0, 0, 1, 1, 2], [0], [0]>} : vector<8x8x8xf32>, vector<8x8x16xf32>, vector<8x8x16xf32> -> vector<8x8x16xf32>
    "tpu.trace_stop"() : () -> ()
    %29 = vector.shape_cast %28 : vector<8x8x16xf32> to vector<8x128xf32>
    %c0_14 = arith.constant 0 : index
    %c0_15 = arith.constant 0 : index
    %30 = vector.load %arg5[%c0_14, %c0_15] : memref<8x128xf32, #tpu.memory_space<vmem>>, vector<8x128xf32>
    tpu.vector_store %arg5[%c0_14, %c0_15], %29 {strides = array<i32>} : memref<8x128xf32, #tpu.memory_space<vmem>>, vector<8x128xf32>,
    return
  }
  func.func @transform_0(%arg0: i32) -> (i32, i32) {
    %c0_i32 = arith.constant 0 : i32
    %c0_i32_0 = arith.constant 0 : i32
    return %arg0, %c0_i32 : i32, i32
  }
  func.func @transform_1(%arg0: i32) -> (i32, i32) {
    %c0_i32 = arith.constant 0 : i32
    %c0_i32_0 = arith.constant 0 : i32
    %c0_i32_1 = arith.constant 0 : i32
    return %c0_i32, %c0_i32_0 : i32, i32
  }
  func.func @transform_2(%arg0: i32) -> (i32, i32) {
    %c0_i32 = arith.constant 0 : i32
    %c0_i32_0 = arith.constant 0 : i32
    %c0_i32_1 = arith.constant 0 : i32
    return %c0_i32, %c0_i32_0 : i32, i32
  }
  func.func @transform_3(%arg0: i32) -> (i32, i32) {
    %c0_i32 = arith.constant 0 : i32
    %c0_i32_0 = arith.constant 0 : i32
    %c0_i32_1 = arith.constant 0 : i32
    return %c0_i32, %c0_i32_0 : i32, i32
  }
  func.func @transform_4(%arg0: i32) -> (i32, i32) {
    %c0_i32 = arith.constant 0 : i32
    %c0_i32_0 = arith.constant 0 : i32
    return %arg0, %c0_i32 : i32, i32
  }
}

</mosaic_0001>

<bundles_post_ra>
// kernel: tpu_custom_call.1
= control target key start
LH: loop header
LB: loop body
LE: loop exit
PB: predicated region body
PF: predicated region fallthrough
CT: control target
= control target key end

     0   :  { %s1418_s0 = inlined_call_operand.vmem [shape: f32[64,32], index: 0, kind: input, shape index: {}]   ;;  %s1419_s1 = inlined_call_operand.vmem [shape: f32[32,16], index: 1, kind: input, shape index: {}]   ;;  %s1420_s2 = inlined_call_operand.vmem [shape: f32[32,16], index: 2, kind: input, shape index: {}]   ;;  %s1421_s3 = inlined_call_operand.vmem [shape: f32[32,16], index: 3, kind: input, shape index: {}]   ;;  %s1422_s4 = inlined_call_operand.hbm [shape: f32[8,128], index: 4, kind: output, shape index: {}]  }
   0x1   :  { %v29_v0 = vld [vmem:[%s1419_s1 + $0x18] sm:$0xff]  ;;  %v28_v1 = vld [vmem:[%s1419_s1 + $0x10] sm:$0xff]  ;;  %v27_v4 = vld [vmem:[%s1419_s1 + $0x8] sm:$0xff] }
   0x2   :  { %v99_v2 = vld [vmem:[%s1420_s2 + $0x18] sm:$0xff]  ;;  %67 = vmatpush.msra.mxu0 %v29_v0  ;;  %v98_v3 = vld [vmem:[%s1420_s2 + $0x10] sm:$0xff]  ;;  %v97_v5 = vld [vmem:[%s1420_s2 + $0x8] sm:$0xff] }
   0x3   :  { %112 = vmatpush.msra.mxu1 %v99_v2  ;;  %v26_v6 = vld [vmem:[%s1419_s1] sm:$0xff] }
   0x4   :  { %68 = vmatpush.msra.mxu0 %v28_v1  ;;  %v96_v7 = vld [vmem:[%s1420_s2] sm:$0xff] }
   0x5   :  { %113 = vmatpush.msra.mxu1 %v98_v3 }
   0x6   :  { %9 = vsyncpa [#allocation3], 0  ;;  %69 = vmatpush.msra.mxu0 %v27_v4  ;;  %v18_v8 = vld [vmem:[%s1418_s0] sm:$0xff]  ;;  %vm30_vm0 = vcmask 261120   ;;  %v19_v9 = vld [vmem:[%s1418_s0 + $0x8] sm:$0xff]  ;;  %vm186_vm1 = vcmask 130048   ;;  %v395_v36 = vlaneseq }
   0x7   :  { %114 = vmatpush.msra.mxu1 %v97_v5  ;;  %v20_v10 = vld [vmem:[%s1418_s0 + $0x10] sm:$0xff]  ;;  %v21_v11 = vld [vmem:[%s1418_s0 + $0x18] sm:$0xff]  ;;  %v22_v12 = vld [vmem:[%s1418_s0 + $0x20] sm:$0xff]  ;;  %vm410_vm3 = vcmask 64512   ;;  %s1140_s26 = smov 48   ;;  %s1141_s27 = smov 16  }
   0x8   :  { %70 = vmatpush.msra.mxu0 %v26_v6  ;;  %v23_v13 = vld [vmem:[%s1418_s0 + $0x28] sm:$0xff]  ;;  %v24_v14 = vld [vmem:[%s1418_s0 + $0x30] sm:$0xff]  ;;  %v25_v15 = vld [vmem:[%s1418_s0 + $0x38] sm:$0xff]  ;;  %v396_v37 = vshrl.u32 %v395_v36, 7  ;;  %v398_v38 = vand.u32 127, %v395_v36  ;;  %s1142_s28 = smov 96  }
   0x9   :  { %115 = vmatpush.msra.mxu1 %v96_v7  ;;  %1021 = vmatmul.msk.f32.vlgmr.msra.gmra.mxu0 %vm30_vm0, %v18_v8  ;;  %v144_v16 = vld [vmem:[%s1421_s3 + $0x18] sm:$0xff]  ;;  %v143_v17 = vld [vmem:[%s1421_s3 + $0x10] sm:$0xff]  ;;  %v142_v18 = vld [vmem:[%s1421_s3 + $0x8] sm:$0xff]  ;;  %s1143_s29 = smov 64   ;;  %s1144_s30 = smov 32  }
   0xa   :  { %1029 = vmatmul.msk.f32.vlgmr.msra.gmra.mxu1 %vm30_vm0, %v18_v8  ;;  %157 = vmatpush.msra.mxu2 %v144_v16  ;;  %v141_v19 = vld [vmem:[%s1421_s3] sm:$0xff]  ;;  %vm1272_vm2 = vcmp.gt.s32.totalorder %v398_v38, %v396_v37  ;;  %s1139_s3 = smov 80   ;;  %s1145_s5 = smov 112  }
   0xb   :  { %s1146_s6 = smov [#allocation2]   ;;  %s1012_s8 = sshll.u32 %s1422_s4, 4  ;;  %s1013_s8 = int_to_ptr.hbm [resolvable:$true] %s1012_s8 }
   0xc   :  { %158 = vmatpush.msra.mxu2 %v143_v17  ;;  %s1010_s7 = sshll.u32 %s1146_s6, 4  ;;  %s1011_s7 = int_to_ptr.vmem [resolvable:$true] %s1010_s7 }
   0xe   :  { %159 = vmatpush.msra.mxu2 %v142_v18 }
  0x10   :  { %160 = vmatpush.msra.mxu2 %v141_v19 }
  0x11   :  { %1022 = vmatmul.msk.f32.gmra.mxu0 %vm30_vm0, %v19_v9  ;;  %1037 = vmatmul.msk.f32.vlgmr.msra.gmra.mxu2 %vm30_vm0, %v18_v8 }
  0x12   :  { %1030 = vmatmul.msk.f32.gmra.mxu1 %vm30_vm0, %v19_v9 }
  0x19   :  { %1023 = vmatmul.msk.f32.gmra.mxu0 %vm30_vm0, %v20_v10  ;;  %1038 = vmatmul.msk.f32.gmra.mxu2 %vm30_vm0, %v19_v9 }
  0x1a   :  { %1031 = vmatmul.msk.f32.gmra.mxu1 %vm30_vm0, %v20_v10 }
  0x21   :  { %1024 = vmatmul.msk.f32.gmra.mxu0 %vm30_vm0, %v21_v11  ;;  %1039 = vmatmul.msk.f32.gmra.mxu2 %vm30_vm0, %v20_v10 }
  0x22   :  { %1032 = vmatmul.msk.f32.gmra.mxu1 %vm30_vm0, %v21_v11 }
  0x29   :  { %1025 = vmatmul.msk.f32.gmra.mxu0 %vm30_vm0, %v22_v12  ;;  %1040 = vmatmul.msk.f32.gmra.mxu2 %vm30_vm0, %v21_v11 }
  0x2a   :  { %1033 = vmatmul.msk.f32.gmra.mxu1 %vm30_vm0, %v22_v12 }
  0x31   :  { %1026 = vmatmul.msk.f32.gmra.mxu0 %vm30_vm0, %v23_v13  ;;  %1041 = vmatmul.msk.f32.gmra.mxu2 %vm30_vm0, %v22_v12 }
  0x32   :  { %1034 = vmatmul.msk.f32.gmra.mxu1 %vm30_vm0, %v23_v13 }
  0x39   :  { %1027 = vmatmul.msk.f32.gmra.mxu0 %vm30_vm0, %v24_v14  ;;  %1042 = vmatmul.msk.f32.gmra.mxu2 %vm30_vm0, %v23_v13 }
  0x3a   :  { %1035 = vmatmul.msk.f32.gmra.mxu1 %vm30_vm0, %v24_v14 }
  0x41   :  { %1028 = vmatmul.msk.f32.gmra.mxu0 %vm30_vm0, %v25_v15  ;;  %1043 = vmatmul.msk.f32.gmra.mxu2 %vm30_vm0, %v24_v14 }
  0x42   :  { %1036 = vmatmul.msk.f32.gmra.mxu1 %vm30_vm0, %v25_v15 }
  0x49   :  { %1044 = vmatmul.msk.f32.gmra.mxu2 %vm30_vm0, %v25_v15 }
  0x86   :  { %v72_v20 = vpop.f32.mrf.mxu0 }
  0x87   :  { %v117_v21 = vpop.f32.mrf.mxu1  ;;  %1045 = vmatpush.xpose.msk.msra.mxu3 %vm186_vm1, %v72_v20 }
  0x8a   :  { %1046 = vmatmul.msk.f32.vlgmr.msra.gmra.mxu3 %vm186_vm1, %v117_v21 }
  0x8e   :  { %v75_v22 = vpop.f32.mrf.mxu0 }
  0x8f   :  { %v120_v23 = vpop.f32.mrf.mxu1  ;;  %1047 = vmatpush.xpose.msk.msrb.mxu3 %vm186_vm1, %v75_v22 }
  0x92   :  { %1048 = vmatmul.msk.f32.vlgmr.msrb.gmra.mxu3 %vm186_vm1, %v120_v23 }
  0x94   :  { %v162_v3 = vpop.f32.mrf.mxu2 }
  0x96   :  { %v78_v24 = vpop.f32.mrf.mxu0 }
  0x97   :  { %v123_v25 = vpop.f32.mrf.mxu1  ;;  %1049 = vmatpush.xpose.msk.msra.mxu3 %vm186_vm1, %v78_v24 }
  0x9a   :  { %1050 = vmatmul.msk.f32.vlgmr.msra.gmra.mxu3 %vm186_vm1, %v123_v25 }
  0x9c   :  { %v165_v20 = vpop.f32.mrf.mxu2 }
  0x9d   :  { %708 = vmatpush.msrb.mxu0 %v165_v20 }
  0x9e   :  { %v81_v26 = vpop.f32.mrf.mxu0 }
  0x9f   :  { %v126_v27 = vpop.f32.mrf.mxu1  ;;  %1051 = vmatpush.xpose.msk.msrb.mxu3 %vm186_vm1, %v81_v26 }
  0xa2   :  { %1052 = vmatmul.msk.f32.vlgmr.msrb.gmra.mxu3 %vm186_vm1, %v126_v27 }
  0xa6   :  { %v84_v28 = vpop.f32.mrf.mxu0 }
  0xa7   :  { %v129_v29 = vpop.f32.mrf.mxu1  ;;  %1053 = vmatpush.xpose.msk.msra.mxu3 %vm186_vm1, %v84_v28 }
  0xaa   :  { %1054 = vmatmul.msk.f32.vlgmr.msra.gmra.mxu3 %vm186_vm1, %v129_v29 }
  0xae   :  { %v87_v30 = vpop.f32.mrf.mxu0 }
  0xaf   :  { %v132_v31 = vpop.f32.mrf.mxu1  ;;  %1055 = vmatpush.xpose.msk.msrb.mxu3 %vm186_vm1, %v87_v30 }
  0xb2   :  { %1056 = vmatmul.msk.f32.vlgmr.msrb.gmra.mxu3 %vm186_vm1, %v132_v31 }
  0xb6   :  { %v90_v32 = vpop.f32.mrf.mxu0 }
  0xb7   :  { %v135_v33 = vpop.f32.mrf.mxu1  ;;  %1057 = vmatpush.xpose.msk.msra.mxu3 %vm186_vm1, %v90_v32 }
  0xba   :  { %1058 = vmatmul.msk.f32.vlgmr.msra.gmra.mxu3 %vm186_vm1, %v135_v33 }
  0xbe   :  { %v93_v34 = vpop.f32.mrf.mxu0 }
  0xbf   :  { %1059 = vmatpush.xpose.msk.msrb.mxu3 %vm186_vm1, %v93_v34  ;;  %v138_v35 = vpop.f32.mrf.mxu1 }
  0xc2   :  { %1060 = vmatmul.msk.f32.vlgmr.msrb.gmra.mxu3 %vm186_vm1, %v138_v35 }
  0xc3   :  { %685 = vmatpush.msra.mxu3 %v162_v3 }
 0x10d   :  { %v210_v40 = vpop.f32.mrf.mxu3 }
 0x10e   :  { %v402_v41 = vsel %vm1272_vm2, -inf, %v210_v40 }
 0x10f   :  { %v411_v42 = vsel %vm410_vm3, %v402_v41, -inf }
 0x110   :  { %v412_v43 = vrot.slane %v411_v42, 4 }
 0x112   :  { %v413_v44 = vmax.f32 %v411_v42, %v412_v43  ;;  %v168_v43 = vpop.f32.mrf.mxu2 }
 0x113   :  { %731 = vmatpush.msrb.mxu1 %v168_v43 }
 0x114   :  { %v414_v45 = vrot.slane %v413_v44, 2 }
 0x115   :  { %v236_v46 = vpop.f32.mrf.mxu3 }
 0x116   :  { %v415_v47 = vmax.f32 %v413_v44, %v414_v45  ;;  %v403_v48 = vsel %vm1272_vm2, -inf, %v236_v46 }
 0x117   :  { %v418_v49 = vsel %vm410_vm3, %v403_v48, -inf }
 0x118   :  { %v416_v50 = vrot.slane %v415_v47, 1  ;;  %v419_v51 = vrot.slane %v418_v49, 4 }
 0x11a   :  { %v417_v52 = vmax.f32 %v415_v47, %v416_v50  ;;  %v420_v53 = vmax.f32 %v418_v49, %v419_v51 }
 0x11c   :  { %v467_v54 = vsub.f32 %v402_v41, %v417_v52  ;;  %v421_v55 = vrot.slane %v420_v53, 2 }
 0x11d   :  { %v262_v56 = vpop.f32.mrf.mxu3 }
 0x11e   :  { %v475_v57 = vmul.f32 1.442695, %v467_v54  ;;  %v422_v58 = vmax.f32 %v420_v53, %v421_v55  ;;  %v404_v59 = vsel %vm1272_vm2, -inf, %v262_v56 }
 0x11f   :  { %v425_v60 = vsel %vm410_vm3, %v404_v59, -inf }
 0x120   :  { %1079 = vpow2.f32 %v475_v57  ;;  %v423_v61 = vrot.slane %v422_v58, 1  ;;  %v426_v62 = vrot.slane %v425_v60, 4 }
 0x122   :  { %v424_v63 = vmax.f32 %v422_v58, %v423_v61  ;;  %v427_v0 = vmax.f32 %v425_v60, %v426_v62 }
 0x124   :  { %v468_v1 = vsub.f32 %v403_v48, %v424_v63  ;;  %v428_v2 = vrot.slane %v427_v0, 2 }
 0x125   :  { %v288_v4 = vpop.f32.mrf.mxu3 }
 0x126   :  { %v1285_v5 = vpop.eup %1079  ;;  %v477_v6 = vmul.f32 1.442695, %v468_v1  ;;  %v429_v7 = vmax.f32 %v427_v0, %v428_v2  ;;  %v405_v8 = vsel %vm1272_vm2, -inf, %v288_v4 }
 0x127   :  { %v491_v9 = vsel %vm410_vm3, %v1285_v5, 0.0  ;;  %v432_v10 = vsel %vm410_vm3, %v405_v8, -inf }
 0x128   :  { %v492_v11 = vrot.slane %v491_v9, 4  ;;  %1081 = vpow2.f32 %v477_v6  ;;  %v430_v12 = vrot.slane %v429_v7, 1  ;;  %v433_v13 = vrot.slane %v432_v10, 4 }
 0x12a   :  { %v493_v14 = vadd.f32 %v492_v11, %v491_v9  ;;  %v431_v15 = vmax.f32 %v429_v7, %v430_v12  ;;  %v434_v16 = vmax.f32 %v432_v10, %v433_v13  ;;  %v171_v13 = vpop.f32.mrf.mxu2 }
 0x12b   :  { %754 = vmatpush.msrb.mxu2 %v171_v13 }
 0x12c   :  { %v494_v17 = vrot.slane %v493_v14, 2  ;;  %v469_v18 = vsub.f32 %v404_v59, %v431_v15  ;;  %v435_v19 = vrot.slane %v434_v16, 2 }
 0x12d   :  { %v314_v21 = vpop.f32.mrf.mxu3 }
 0x12e   :  { %v1292_v22 = vpop.eup %1081  ;;  %v495_v23 = vadd.f32 %v494_v17, %v493_v14  ;;  %v479_v24 = vmul.f32 1.442695, %v469_v18  ;;  %v436_v25 = vmax.f32 %v434_v16, %v435_v19  ;;  %v406_v26 = vsel %vm1272_vm2, -inf, %v314_v21 }
 0x12f   :  { %v498_v27 = vsel %vm410_vm3, %v1292_v22, 0.0  ;;  %v439_v28 = vsel %vm410_vm3, %v406_v26, -inf }
 0x130   :  { %v496_v29 = vrot.slane %v495_v23, 1  ;;  %v499_v30 = vrot.slane %v498_v27, 4  ;;  %1083 = vpow2.f32 %v479_v24  ;;  %v437_v31 = vrot.slane %v436_v25, 1 }
 0x131   :  { %v440_v32 = vrot.slane %v439_v28, 4 }
 0x132   :  { %v497_v33 = vadd.f32 %v496_v29, %v495_v23  ;;  %v500_v34 = vadd.f32 %v499_v30, %v498_v27  ;;  %v438_v35 = vmax.f32 %v436_v25, %v437_v31 }
 0x133   :  { %v441_v36 = vmax.f32 %v439_v28, %v440_v32 }
 0x134   :  { %1085 = vrcp.f32 %v497_v33  ;;  %v501_v37 = vrot.slane %v500_v34, 2  ;;  %v470_v38 = vsub.f32 %v405_v8, %v438_v35  ;;  %v556_v62 = vand.u32 2147483647, %v497_v33 }
 0x135   :  { %v442_v40 = vrot.slane %v441_v36, 2  ;;  %v340_v41 = vpop.f32.mrf.mxu3  ;;  %v558_v1 = vand.u32 2147483648, %v497_v33  ;;  %vm552_vm5 = vweird.f32 %v497_v33 }
 0x136   :  { %v1299_v42 = vpop.eup %1083  ;;  %v1303_v44 = vsel %vm1272_vm2, -inf, %v340_v41  ;;  %v502_v45 = vadd.f32 %v501_v37, %v500_v34  ;;  %v481_v47 = vmul.f32 1.442695, %v470_v38  ;;  %vm557_vm7 = vcmp.eq.f32.partialorder %v556_v62, 8.507059e+37 }
 0x137   :  { %v505_v46 = vsel %vm410_vm3, %v1299_v42, 0.0  ;;  %v443_v48 = vmax.f32 %v441_v36, %v442_v40  ;;  %v446_v50 = vsel %vm410_vm3, %v1303_v44, -inf  ;;  %v559_v17 = vor.u32 1.1754944e-38, %v558_v1 }
 0x138   :  { %v506_v49 = vrot.slane %v505_v46, 4  ;;  %v503_v51 = vrot.slane %v502_v45, 1  ;;  %1087 = vpow2.f32 %v481_v47  ;;  %v447_v53 = vrot.slane %v446_v50, 4 }
 0x139   :  { %v444_v52 = vrot.slane %v443_v48, 1 }
 0x13a   :  { %v1086_v54 = vpop.eup %1085  ;;  %v507_v55 = vadd.f32 %v506_v49, %v505_v46  ;;  %v1309_v57 = vadd.f32 %v503_v51, %v502_v45  ;;  %v448_v60 = vmax.f32 %v446_v50, %v447_v53 }
 0x13b   :  { %v548_v56 = vmul.f32 %v1086_v54, %v497_v33  ;;  %v445_v58 = vmax.f32 %v443_v48, %v444_v52  ;;  %vm553_vm4 = vweird.f32 %v1086_v54 }
 0x13c   :  { %v508_v59 = vrot.slane %v507_v55, 2  ;;  %1089 = vrcp.f32 %v1309_v57  ;;  %v449_v3 = vrot.slane %v448_v60, 2  ;;  %vm554_vm6 = vmor %vm552_vm5, %vm553_vm4  ;;  %vm567_vm8 = vweird.f32 %v1309_v57 }
 0x13d   :  { %v549_v61 = vsub.f32 1.0, %v548_v56  ;;  %v471_v63 = vsub.f32 %v406_v26, %v445_v58  ;;  %v366_v0 = vpop.f32.mrf.mxu3  ;;  %v571_v35 = vand.u32 2147483647, %v1309_v57  ;;  %v573_v40 = vand.u32 2147483648, %v1309_v57  ;;  %v174_v56 = vpop.f32.mrf.mxu2 }
 0x13e   :  { %v509_v2 = vadd.f32 %v508_v59, %v507_v55  ;;  %v1314_v4 = vsel %vm1272_vm2, -inf, %v366_v0  ;;  %v1316_v6 = vpop.eup %1087  ;;  %v450_v12 = vmax.f32 %v448_v60, %v449_v3  ;;  %777 = vmatpush.msrb.mxu3 %v174_v56 }
 0x13f   :  { %v550_v7 = vmul.f32 %v1086_v54, %v549_v61  ;;  %v483_v8 = vmul.f32 1.442695, %v471_v63  ;;  %v453_v9 = vsel %vm410_vm3, %v1314_v4, -inf  ;;  %v512_v11 = vsel %vm410_vm3, %v1316_v6, 0.0 }
 0x140   :  { %v510_v10 = vrot.slane %v509_v2, 1  ;;  %v454_v14 = vrot.slane %v453_v9, 4  ;;  %v513_v16 = vrot.slane %v512_v11, 4  ;;  %v451_v19 = vrot.slane %v450_v12, 1 }
 0x141   :  { %v551_v15 = vadd.f32 %v1086_v54, %v550_v7  ;;  %1091 = vpow2.f32 %v483_v8  ;;  %vm1342_vm10 = vcmp.eq.f32.partialorder %v571_v35, 8.507059e+37  ;;  %v574_v60 = vor.u32 1.1754944e-38, %v573_v40 }
 0x142   :  { %v1322_v18 = vadd.f32 %v510_v10, %v509_v2  ;;  %v455_v20 = vmax.f32 %v453_v9, %v454_v14  ;;  %v1090_v21 = vpop.eup %1089  ;;  %v514_v24 = vadd.f32 %v513_v16, %v512_v11  ;;  %v452_v26 = vmax.f32 %v450_v12, %v451_v19 }
 0x143   :  { %v555_v23 = vsel %vm554_vm6, %v1086_v54, %v551_v15  ;;  %v563_v31 = vmul.f32 %v1090_v21, %v1309_v57  ;;  %vm568_vm9 = vweird.f32 %v1090_v21 }
 0x144   :  { %v560_v25 = vsel %vm557_vm7, %v559_v17, %v555_v23  ;;  %1093 = vrcp.f32 %v1322_v18  ;;  %v456_v27 = vrot.slane %v455_v20, 2  ;;  %v515_v29 = vrot.slane %v514_v24, 2  ;;  %vm569_vm11 = vmor %vm567_vm8, %vm568_vm9 }
 0x145   :  { %v561_v28 = vmul.f32 %v1285_v5, %v560_v25  ;;  %v392_v30 = vpop.f32.mrf.mxu3  ;;  %v472_v32 = vsub.f32 %v1303_v44, %v452_v26  ;;  %v564_v38 = vsub.f32 1.0, %v563_v31  ;;  %v586_v61 = vand.u32 2147483647, %v1322_v18 }
 0x146   :  { %v457_v33 = vmax.f32 %v455_v20, %v456_v27  ;;  %v1331_v34 = vsel %vm1272_vm2, -inf, %v392_v30  ;;  %v516_v37 = vadd.f32 %v515_v29, %v514_v24  ;;  %vm582_vm13 = vweird.f32 %v1322_v18  ;;  %v177_v20 = vpop.f32.mrf.mxu2 }
 0x147   :  { %v1334_v36 = vpop.eup %1091  ;;  %v460_v5 = vsel %vm410_vm3, %v1331_v34, -inf  ;;  %1061 = vmatmul.msk.f32.vlgmr.msra.gmra.mxu3 %vm410_vm3, %v561_v28  ;;  %v485_v43 = vmul.f32 1.442695, %v472_v32  ;;  %v565_v47 = vmul.f32 %v1090_v21, %v564_v38  ;;  %vm587_vm15 = vcmp.eq.f32.partialorder %v586_v61, 8.507059e+37  ;;  %800 = vmatpush.msra.mxu0 %v177_v20 }
 0x148   :  { %v519_v41 = vsel %vm410_vm3, %v1334_v36, 0.0  ;;  %v458_v39 = vrot.slane %v457_v33, 1  ;;  %v461_v44 = vrot.slane %v460_v5, 4  ;;  %v517_v45 = vrot.slane %v516_v37, 1 }
 0x149   :  { %v520_v46 = vrot.slane %v519_v41, 4  ;;  %1095 = vpow2.f32 %v485_v43  ;;  %v566_v54 = vadd.f32 %v1090_v21, %v565_v47 }
 0x14a   :  { %v1094_v48 = vpop.eup %1093  ;;  %v459_v49 = vmax.f32 %v457_v33, %v458_v39  ;;  %v462_v50 = vmax.f32 %v460_v5, %v461_v44  ;;  %v1346_v52 = vadd.f32 %v517_v45, %v516_v37 }
 0x14b   :  { %v521_v53 = vadd.f32 %v520_v46, %v519_v41  ;;  %v578_v55 = vmul.f32 %v1094_v48, %v1322_v18  ;;  %v570_v63 = vsel %vm569_vm11, %v1090_v21, %v566_v54  ;;  %vm583_vm12 = vweird.f32 %v1094_v48 }
 0x14c   :  { %v473_v58 = vsub.f32 %v1314_v4, %v459_v49  ;;  %v463_v59 = vrot.slane %v462_v50, 2  ;;  %1097 = vrcp.f32 %v1346_v52  ;;  %v575_v3 = vsel %vm1342_vm10, %v574_v60, %v570_v63  ;;  %vm584_vm14 = vmor %vm582_vm13, %vm583_vm12 }
 0x14d   :  { %v522_v62 = vrot.slane %v521_v53, 2  ;;  %v579_v0 = vsub.f32 1.0, %v578_v55  ;;  %v588_v4 = vand.u32 2147483648, %v1322_v18  ;;  %v576_v57 = vmul.f32 %v1292_v22, %v575_v3 }
 0x14e   :  { %v487_v1 = vmul.f32 1.442695, %v473_v58  ;;  %v464_v2 = vmax.f32 %v462_v50, %v463_v59  ;;  %v601_v38 = vand.u32 2147483647, %v1346_v52  ;;  %vm597_vm4 = vweird.f32 %v1346_v52 }
 0x14f   :  { %v523_v7 = vadd.f32 %v522_v62, %v521_v53  ;;  %v580_v8 = vmul.f32 %v1094_v48, %v579_v0  ;;  %v1358_v9 = vpop.eup %1095  ;;  %1062 = vmatmul.msk.f32.vlgmr.msrb.gmra.mxu0 %vm410_vm3, %v576_v57  ;;  %v589_v16 = vor.u32 1.1754944e-38, %v588_v4 }
 0x150   :  { %1099 = vpow2.f32 %v487_v1  ;;  %v465_v10 = vrot.slane %v464_v2, 1  ;;  %v526_v12 = vsel %vm410_vm3, %v1358_v9, 0.0  ;;  %vm602_vm6 = vcmp.eq.f32.partialorder %v601_v38, 8.507059e+37 }
 0x151   :  { %v524_v11 = vrot.slane %v523_v7, 1  ;;  %v581_v13 = vadd.f32 %v1094_v48, %v580_v8  ;;  %v527_v14 = vrot.slane %v526_v12, 4 }
 0x152   :  { %v466_v15 = vmax.f32 %v464_v2, %v465_v10  ;;  %v1098_v22 = vpop.eup %1097 }
 0x153   :  { %v525_v17 = vadd.f32 %v524_v11, %v523_v7  ;;  %v585_v19 = vsel %vm584_vm14, %v1094_v48, %v581_v13  ;;  %v528_v21 = vadd.f32 %v527_v14, %v526_v12  ;;  %v593_v25 = vmul.f32 %v1098_v22, %v1346_v52 }
 0x154   :  { %v474_v23 = vsub.f32 %v1331_v34, %v466_v15  ;;  %v590_v24 = vsel %vm587_vm15, %v589_v16, %v585_v19  ;;  %vm598_vm2 = vweird.f32 %v1098_v22  ;;  %v603_v34 = vand.u32 2147483648, %v1346_v52 }
 0x155   :  { %1101 = vrcp.f32 %v525_v17  ;;  %v529_v18 = vrot.slane %v528_v21, 2  ;;  %v591_v28 = vmul.f32 %v1299_v42, %v590_v24  ;;  %v594_v29 = vsub.f32 1.0, %v593_v25  ;;  %v180_v42 = vpop.f32.mrf.mxu2  ;;  %vm599_vm5 = vmor %vm597_vm4, %vm598_vm2 }
 0x156   :  { %v1366_v26 = vpop.eup %1099  ;;  %v489_v27 = vmul.f32 1.442695, %v474_v23  ;;  %823 = vmatpush.msra.mxu1 %v180_v42  ;;  %v604_v45 = vor.u32 1.1754944e-38, %v603_v34  ;;  %v616_v48 = vand.u32 2147483647, %v525_v17  ;;  %v618_v49 = vand.u32 2147483648, %v525_v17 }
 0x157   :  { %v533_v30 = vsel %vm410_vm3, %v1366_v26, 0.0  ;;  %v530_v31 = vadd.f32 %v529_v18, %v528_v21  ;;  %1063 = vmatmul.msk.f32.vlgmr.msrb.gmra.mxu1 %vm410_vm3, %v591_v28  ;;  %v595_v33 = vmul.f32 %v1098_v22, %v594_v29  ;;  %vm612_vm8 = vweird.f32 %v525_v17 }
 0x158   :  { %v534_v32 = vrot.slane %v533_v30, 4  ;;  %1103 = vpow2.f32 %v489_v27  ;;  %v619_v60 = vor.u32 1.1754944e-38, %v618_v49  ;;  %vm617_vm10 = vcmp.eq.f32.partialorder %v616_v48, 8.507059e+37 }
 0x159   :  { %v531_v35 = vrot.slane %v530_v31, 1  ;;  %v596_v5 = vadd.f32 %v1098_v22, %v595_v33 }
 0x15a   :  { %v535_v37 = vadd.f32 %v534_v32, %v533_v30 }
 0x15b   :  { %v1102_v40 = vpop.eup %1101  ;;  %v532_v43 = vadd.f32 %v531_v35, %v530_v31  ;;  %v600_v44 = vsel %vm599_vm5, %v1098_v22, %v596_v5 }
 0x15c   :  { %v608_v41 = vmul.f32 %v1102_v40, %v525_v17  ;;  %v536_v39 = vrot.slane %v535_v37, 2  ;;  %v605_v52 = vsel %vm602_vm6, %v604_v45, %v600_v44  ;;  %vm613_vm7 = vweird.f32 %v1102_v40 }
 0x15d   :  { %1105 = vrcp.f32 %v532_v43  ;;  %v606_v55 = vmul.f32 %v1316_v6, %v605_v52  ;;  %vm614_vm9 = vmor %vm612_vm8, %vm613_vm7  ;;  %v183_v62 = vpop.f32.mrf.mxu2  ;;  %v633_v57 = vand.u32 2147483648, %v532_v43  ;;  %v631_v10 = vand.u32 2147483647, %v532_v43 }
 0x15e   :  { %v1375_v46 = vpop.eup %1103  ;;  %v609_v47 = vsub.f32 1.0, %v608_v41  ;;  %v537_v50 = vadd.f32 %v536_v39, %v535_v37  ;;  %846 = vmatpush.msra.mxu2 %v183_v62  ;;  %vm627_vm12 = vweird.f32 %v532_v43 }
 0x15f   :  { %v540_v51 = vsel %vm410_vm3, %v1375_v46, 0.0  ;;  %1064 = vmatmul.msk.f32.vlgmr.msrb.gmra.mxu2 %vm410_vm3, %v606_v55  ;;  %v634_v15 = vor.u32 1.1754944e-38, %v633_v57  ;;  %vm632_vm14 = vcmp.eq.f32.partialorder %v631_v10, 8.507059e+37 }
 0x160   :  { %v610_v53 = vmul.f32 %v1102_v40, %v609_v47  ;;  %v541_v54 = vrot.slane %v540_v51, 4  ;;  %v538_v56 = vrot.slane %v537_v50, 1 }
 0x162   :  { %v611_v58 = vadd.f32 %v1102_v40, %v610_v53  ;;  %v542_v59 = vadd.f32 %v541_v54, %v540_v51  ;;  %v539_v61 = vadd.f32 %v538_v56, %v537_v50 }
 0x163   :  { %v1106_v63 = vpop.eup %1105 }
 0x164   :  { %v615_v0 = vsel %vm614_vm9, %v1102_v40, %v611_v58  ;;  %v543_v1 = vrot.slane %v542_v59, 2  ;;  %v623_v3 = vmul.f32 %v1106_v63, %v532_v43  ;;  %1107 = vrcp.f32 %v539_v61 }
 0x165   :  { %v620_v2 = vsel %vm617_vm10, %v619_v60, %v615_v0  ;;  %vm628_vm11 = vweird.f32 %v1106_v63  ;;  %v648_v20 = vand.u32 2147483648, %v539_v61  ;;  %v646_v23 = vand.u32 2147483647, %v539_v61 }
 0x166   :  { %v621_v6 = vmul.f32 %v1334_v36, %v620_v2  ;;  %v624_v4 = vsub.f32 1.0, %v623_v3  ;;  %v544_v7 = vadd.f32 %v543_v1, %v542_v59  ;;  %vm629_vm13 = vmor %vm627_vm12, %vm628_vm11  ;;  %vm642_vm2 = vweird.f32 %v539_v61 }
 0x167   :  { %v649_v18 = vor.u32 1.1754944e-38, %v648_v20  ;;  %vm647_vm5 = vcmp.eq.f32.partialorder %v646_v23, 8.507059e+37  ;;  %v1137_v43 = vmov 1983009808   ;;  %vm852_vm10 = vcmask 1047556  }
 0x168   :  { %1065 = vmatmul.msk.f32.vlgmr.msrb.gmra.mxu3 %vm410_vm3, %v621_v6  ;;  %v625_v8 = vmul.f32 %v1106_v63, %v624_v4  ;;  %v545_v11 = vrot.slane %v544_v7, 1  ;;  %v857_v39 = vunpack.c.l.s4 %v1137_v43  ;;  %v1138_v3 = vmov 1934713408  }
 0x169   :  { %v905_v6 = vunpack.c.l.s4 %v1138_v3  ;;  %vm996_vm11 = vcmask 523264   ;;  %vm998_vm12 = vcmask 654336  }
 0x16a   :  { %v1108_v12 = vpop.eup %1107  ;;  %v626_v13 = vadd.f32 %v1106_v63, %v625_v8  ;;  %v546_v14 = vadd.f32 %v545_v11, %v544_v7  ;;  %v858_v49 = vunpack.c.0.s8 %v857_v39 }
 0x16b   :  { %v638_v16 = vmul.f32 %v1108_v12, %v539_v61  ;;  %vm643_vm15 = vweird.f32 %v1108_v12 }
 0x16c   :  { %v630_v22 = vsel %vm629_vm13, %v1106_v63, %v626_v13  ;;  %1109 = vrcp.f32 %v546_v14  ;;  %vm644_vm4 = vmor %vm642_vm2, %vm643_vm15  ;;  %v663_v32 = vand.u32 2147483648, %v546_v14  ;;  %v661_v33 = vand.u32 2147483647, %v546_v14 }
 0x16d   :  { %v635_v36 = vsel %vm632_vm14, %v634_v15, %v630_v22  ;;  %v639_v17 = vsub.f32 1.0, %v638_v16  ;;  %vm657_vm7 = vweird.f32 %v546_v14  ;;  %v906_v16 = vunpack.c.0.s8 %v905_v6 }
 0x16e   :  { %v636_v19 = vmul.f32 %v1358_v9, %v635_v36  ;;  %v664_v35 = vor.u32 1.1754944e-38, %v663_v32  ;;  %vm662_vm9 = vcmp.eq.f32.partialorder %v661_v33, 8.507059e+37  ;;  %vm1000_vm13 = vcmask 785408  }
 0x16f   :  { %v640_v21 = vmul.f32 %v1108_v12, %v639_v17  ;;  %vm1002_vm14 = vcmask 916480  }
 0x170   :  { %1066 = vmatmul.msk.f32.vlgmr.msra.gmra.mxu0 %vm410_vm3, %v636_v19 }
 0x171   :  { %v641_v24 = vadd.f32 %v1108_v12, %v640_v21 }
 0x172   :  { %v1110_v25 = vpop.eup %1109 }
 0x173   :  { %v645_v27 = vsel %vm644_vm4, %v1108_v12, %v641_v24  ;;  %v653_v28 = vmul.f32 %v1110_v25, %v546_v14  ;;  %vm658_vm6 = vweird.f32 %v1110_v25 }
 0x174   :  { %v650_v29 = vsel %vm647_vm5, %v649_v18, %v645_v27  ;;  %vm659_vm8 = vmor %vm657_vm7, %vm658_vm6 }
 0x175   :  { %v651_v30 = vmul.f32 %v1366_v26, %v650_v29  ;;  %v654_v31 = vsub.f32 1.0, %v653_v28 }
 0x177   :  { %v655_v9 = vmul.f32 %v1110_v25, %v654_v31  ;;  %1067 = vmatmul.msk.f32.vlgmr.msra.gmra.mxu1 %vm410_vm3, %v651_v30 }
 0x179   :  { %v656_v34 = vadd.f32 %v1110_v25, %v655_v9 }
 0x17b   :  { %v660_v37 = vsel %vm659_vm8, %v1110_v25, %v656_v34 }
 0x17c   :  { %v665_v5 = vsel %vm662_vm9, %v664_v35, %v660_v37 }
 0x17d   :  { %v666_v38 = vmul.f32 %v1375_v46, %v665_v5 }
 0x17f   :  { %1068 = vmatmul.msk.f32.vlgmr.msra.gmra.mxu2 %vm410_vm3, %v666_v38  ;;  %vm994_vm3 = vcmask 392192  }
 0x1ca   :  { %v687_v41 = vpop.f32.mrf.mxu3 }
 0x1cb   :  { %v854_v53 = vrot.slane %v687_v41, 4 }
 0x1cc   :  { %v710_v42 = vpop.f32.mrf.mxu0 }
 0x1cd   :  { %v866_v45 = vrot.slane %v710_v42, 4 }
 0x1d4   :  { %v733_v40 = vpop.f32.mrf.mxu1 }
 0x1d5   :  { %v851_v47 = vrot.slane %v733_v40, 4  ;;  %v855_v58 = vsel %vm852_vm10, %v733_v40, %v854_v53 }
 0x1d6   :  { %v863_v0 = vperm.slane %v855_v58, %v858_v49 }
 0x1d7   :  { %v853_v46 = vsel %vm852_vm10, %v851_v47, %v687_v41 }
 0x1d8   :  { %v859_v59 = vperm.slane %v853_v46, %v858_v49  ;;  %v914_v40 = vrot.slane %v863_v0, 4 }
 0x1da   :  { %v902_v4 = vrot.slane %v859_v59, 4 }
 0x1e2   :  { %v756_v26 = vpop.f32.mrf.mxu2 }
 0x1e3   :  { %v864_v44 = vrot.slane %v756_v26, 4  ;;  %v867_v48 = vsel %vm852_vm10, %v756_v26, %v866_v45 }
 0x1e4   :  { %v875_v52 = vperm.slane %v867_v48, %v858_v49 }
 0x1e5   :  { %v865_v50 = vsel %vm852_vm10, %v864_v44, %v710_v42 }
 0x1e6   :  { %v871_v54 = vperm.slane %v865_v50, %v858_v49  ;;  %v912_v60 = vrot.slane %v875_v52, 4  ;;  %v915_v41 = vsel %vm852_vm10, %v875_v52, %v914_v40 }
 0x1e7   :  { %v923_v45 = vperm.slane %v915_v41, %v906_v16 }
 0x1e8   :  { %v900_v62 = vrot.slane %v871_v54, 4  ;;  %v913_v57 = vsel %vm852_vm10, %v912_v60, %v863_v0  ;;  %v903_v12 = vsel %vm852_vm10, %v871_v54, %v902_v4 }
 0x1e9   :  { %v919_v17 = vperm.slane %v913_v57, %v906_v16  ;;  %v911_v19 = vperm.slane %v903_v12, %v906_v16 }
 0x1ea   :  { %v901_v13 = vsel %vm852_vm10, %v900_v62, %v859_v59 }
 0x1eb   :  { %v779_v55 = vpop.f32.mrf.mxu3  ;;  %v907_v20 = vperm.slane %v901_v13, %v906_v16  ;;  %v958_v31 = vrot.slane %v919_v17, 4  ;;  %v954_v9 = vrot.slane %v911_v19, 4 }
 0x1ec   :  { %v878_v61 = vrot.slane %v779_v55, 4 }
 0x1ed   :  { %v802_v63 = vpop.f32.mrf.mxu0  ;;  %v950_v34 = vrot.slane %v907_v20, 4 }
 0x1ee   :  { %v890_v7 = vrot.slane %v802_v63, 4 }
 0x1f4   :  { %v825_v51 = vpop.f32.mrf.mxu1 }
 0x1f5   :  { %v876_v56 = vrot.slane %v825_v51, 4  ;;  %v879_v2 = vsel %vm852_vm10, %v825_v51, %v878_v61  ;;  %v962_v51 = vrot.slane %v923_v45, 4 }
 0x1f6   :  { %v887_v10 = vperm.slane %v879_v2, %v858_v49 }
 0x1f7   :  { %v877_v1 = vsel %vm852_vm10, %v876_v56, %v779_v55 }
 0x1f8   :  { %v883_v8 = vperm.slane %v877_v1, %v858_v49  ;;  %v938_v23 = vrot.slane %v887_v10, 4 }
 0x1fa   :  { %v926_v21 = vrot.slane %v883_v8, 4 }
 0x202   :  { %v848_v11 = vpop.f32.mrf.mxu2 }
 0x203   :  { %v888_v14 = vrot.slane %v848_v11, 4  ;;  %v891_v15 = vsel %vm852_vm10, %v848_v11, %v890_v7 }
 0x204   :  { %v899_v22 = vperm.slane %v891_v15, %v858_v49 }
 0x205   :  { %v889_v36 = vsel %vm852_vm10, %v888_v14, %v802_v63 }
 0x206   :  { %v895_v24 = vperm.slane %v889_v36, %v858_v49  ;;  %v936_v25 = vrot.slane %v899_v22, 4  ;;  %v939_v27 = vsel %vm852_vm10, %v899_v22, %v938_v23 }
 0x207   :  { %v947_v38 = vperm.slane %v939_v27, %v906_v16 }
 0x208   :  { %v924_v18 = vrot.slane %v895_v24, 4  ;;  %v937_v28 = vsel %vm852_vm10, %v936_v25, %v887_v10  ;;  %v927_v29 = vsel %vm852_vm10, %v895_v24, %v926_v21 }
 0x209   :  { %v943_v30 = vperm.slane %v937_v28, %v906_v16  ;;  %v935_v32 = vperm.slane %v927_v29, %v906_v16  ;;  %v960_v43 = vrot.slane %v947_v38, 4  ;;  %v963_v46 = vsel %vm852_vm10, %v947_v38, %v962_v51 }
 0x20a   :  { %v925_v33 = vsel %vm852_vm10, %v924_v18, %v883_v8 }
 0x20b   :  { %v959_v35 = vsel %vm852_vm10, %v943_v30, %v958_v31  ;;  %v955_v37 = vsel %vm852_vm10, %v935_v32, %v954_v9  ;;  %v931_v5 = vperm.slane %v925_v33, %v906_v16  ;;  %v956_v39 = vrot.slane %v943_v30, 4 }
 0x20c   :  { %981 = vrot.lane.b32.xlu2 %v959_v35, %s1139_s3  ;;  %973 = vrot.lane.b32.xlu1 %v955_v37, %s1140_s26  ;;  %v952_v47 = vrot.slane %v935_v32, 4  ;;  %v961_v48 = vsel %vm852_vm10, %v960_v43, %v923_v45 }
 0x20d   :  { %v951_v26 = vsel %vm852_vm10, %v931_v5, %v950_v34  ;;  %v948_v42 = vrot.slane %v931_v5, 4  ;;  %v957_v49 = vsel %vm852_vm10, %v956_v39, %v919_v17 }
 0x20e   :  { %965 = vrot.lane.b32.xlu0 %v951_v26, %s1141_s27  ;;  %v953_v50 = vsel %vm852_vm10, %v952_v47, %v911_v19 }
 0x20f   :  { %v949_v44 = vsel %vm852_vm10, %v948_v42, %v907_v20 }
 0x214   :  { %985 = vrot.lane.b32.xlu2 %v961_v48, %s1142_s28  ;;  %977 = vrot.lane.b32.xlu1 %v957_v49, %s1143_s29 }
 0x216   :  { %969 = vrot.lane.b32.xlu0 %v953_v50, %s1144_s30 }
 0x21e   :  { %989 = vrot.lane.b32.xlu0 %v963_v46, %s1145_s5 }
 0x266   :  { %v982_v54 = vpop.permute.xlu2 %981 }
 0x26e   :  { %v986_v63 = vpop.permute.xlu2 %985 }
 0x27e   :  { %v974_v52 = vpop.permute.xlu1 %973 }
 0x280   :  { %v966_v53 = vpop.permute.xlu0 %965 }
 0x281   :  { %v992_v55 = vsel %vm186_vm1, %v949_v44, %v966_v53 }
 0x286   :  { %v978_v59 = vpop.permute.xlu1 %977 }
 0x288   :  { %v970_v56 = vpop.permute.xlu0 %969 }
 0x289   :  { %v993_v58 = vsel %vm30_vm0, %v992_v55, %v970_v56 }
 0x28a   :  { %v995_v60 = vsel %vm994_vm3, %v993_v58, %v974_v52 }
 0x28b   :  { %v997_v61 = vsel %vm996_vm11, %v995_v60, %v978_v59 }
 0x28c   :  { %v999_v62 = vsel %vm998_vm12, %v997_v61, %v982_v54 }
 0x28d   :  { %v1001_v1 = vsel %vm1000_vm13, %v999_v62, %v986_v63 }
 0x290   :  { %v990_v0 = vpop.permute.xlu0 %989 }
 0x291   :  { %v1003_v2 = vsel %vm1002_vm14, %v1001_v1, %v990_v0 }
 0x292   :  { %1004 = vst [vmem:[#allocation2] sm:$0xff] %v1003_v2 }
 0x293   :  { %1015 = dma.vmem_to_hbm [thread:$0]  %s1011_s7, 128, %s1013_s8, [#allocation3]  }
 0x294   :  { %1135 = dma.done.wait [#allocation3], 128  }
 0x295   :  { %1136 = vsyncadd [#allocation3], 4294967168 }
 0x296   :  { %1020 = vsyncpa [#allocation3], 1 }

</bundles_post_ra>
